<compile_context>
chip_gen: v5e
topology: v5e:2x2
jax: 0.10.0
libtpu: 0.0.40
codegen_flags: <defaults>
</compile_context>

<pallas_src>
import jax
import jax.numpy as jnp
from jax.experimental import pallas as pl
from jax.experimental.pallas import tpu as pltpu


def _round_up(x, m):
    return ((x + m - 1) // m) * m


# ----------------------------------------------------------------------------------
# Kernel
# ----------------------------------------------------------------------------------
def _actor_mlp_kernel(x_ref,
                      w1_ref, w2_ref, w3_ref, w4_ref, w5_ref,
                      b_ref,
                      o_ref):
    """Fused 5-layer MLP + softmax: 5 MXU matmuls with f32 accumulation; bias/ReLU in
    f32 then stored back in the compute dtype; softmax epilogue in f32."""
    cd = w1_ref.dtype                      # compute dtype fed to the MXU (bf16 or f32)
    f1 = w1_ref.shape[1]
    f2 = w2_ref.shape[1]
    f3 = w3_ref.shape[1]
    f4 = w4_ref.shape[1]
    f5 = w5_ref.shape[1]

    # x arrives as f32; cast to the MXU dtype in-kernel (hides under MXU time).
    x = x_ref[...].astype(cd)

    h = jnp.dot(x, w1_ref[...], preferred_element_type=jnp.float32)
    h = jnp.maximum(h + b_ref[0:1, 0:f1], 0.0).astype(cd)   # fused downcast

    h = jnp.dot(h, w2_ref[...], preferred_element_type=jnp.float32)
    h = jnp.maximum(h + b_ref[1:2, 0:f2], 0.0).astype(cd)

    h = jnp.dot(h, w3_ref[...], preferred_element_type=jnp.float32)
    h = jnp.maximum(h + b_ref[2:3, 0:f3], 0.0).astype(cd)

    h = jnp.dot(h, w4_ref[...], preferred_element_type=jnp.float32)
    h = jnp.maximum(h + b_ref[3:4, 0:f4], 0.0).astype(cd)

    logits = jnp.dot(h, w5_ref[...], preferred_element_type=jnp.float32)
    logits = logits + b_ref[4:5, 0:f5]

    # Numerically stable softmax over the last (lane) axis, in f32.
    m = jnp.max(logits, axis=-1, keepdims=True)
    e = jnp.exp(logits - m)
    s = jnp.sum(e, axis=-1, keepdims=True)
    # EUP reciprocal (exact) keeps the divide off the VALU and rows summing to 1.
    o_ref[...] = (e * pl.reciprocal(s, approx=False)).astype(o_ref.dtype)


# ----------------------------------------------------------------------------------
# One-time parameter preparation (hoisted out of the per-call path)
# ----------------------------------------------------------------------------------
def prepare_params(params, compute_dtype=jnp.bfloat16):
    """Cast weights to the MXU compute dtype and pack the five biases into one
    (5, max_width) f32 block. Call ONCE; reuse the result for every forward call."""
    w1, b1, w2, b2, w3, b3, w4, b4, w5, b5 = params
    ws = tuple(w.astype(compute_dtype) for w in (w1, w2, w3, w4, w5))
    widths = tuple(w.shape[1] for w in ws)
    fmax = max(widths)
    bias = jnp.zeros((5, fmax), jnp.float32)
    for r, b in enumerate((b1, b2, b3, b4, b5)):
        bias = bias.at[r, : b.size].set(b.reshape(-1).astype(jnp.float32))
    return ws + (bias,)


def _pick_batch_tile(B, batch_tile):
    """16-row aligned tile; capped at ceil(B/2) (rounded up) so grid >= 2 when the
    batch allows it -> both v7x TensorCores are used; never larger than the padded B."""
    half = _round_up(max((B + 1) // 2, 16), 16)
    full = _round_up(B, 16)
    return max(16, min(batch_tile, half, full))


# ----------------------------------------------------------------------------------
# Forward wrapper
# ----------------------------------------------------------------------------------
def actor_mlp_v2_forward(x, prepped, *, batch_tile=512):
    """x: [B, actor_input_dim] float32. `prepped` = prepare_params(params, ...).
    Returns softmax probabilities [B, fc5_units] float32."""
    w1, w2, w3, w4, w5, bias = prepped
    B, D_in = x.shape
    assert w1.shape[0] == D_in, "input feature dim must match fc1 in_features"
    f1, f2, f3, f4, f5 = (w.shape[1] for w in (w1, w2, w3, w4, w5))
    fmax = bias.shape[1]

    batch_tile = _pick_batch_tile(B, batch_tile)
    assert batch_tile % 16 == 0

    # Pad the batch to a multiple of batch_tile (cdiv grid; slice output afterwards).
    grid_b = pl.cdiv(B, batch_tile)
    B_pad = grid_b * batch_tile
    if B_pad != B:
        x = jnp.pad(x, ((0, B_pad - B), (0, 0)))

    rep = lambda i: (0, 0)  # weights/bias: same block every step -> DMA'd once, resident

    out = pl.pallas_call(
        _actor_mlp_kernel,
        out_shape=jax.ShapeDtypeStruct((B_pad, f5), jnp.float32),
        grid_spec=pltpu.PrefetchScalarGridSpec(
            num_scalar_prefetch=0,
            grid=(grid_b,),
            in_specs=[
                # full-width feature block (== array dim) is legal and avoids K padding
                pl.BlockSpec((batch_tile, D_in), lambda i: (i, 0)),   # x tile (f32)
                pl.BlockSpec((D_in, f1), rep),    # w1
                pl.BlockSpec((f1, f2), rep),      # w2
                pl.BlockSpec((f2, f3), rep),      # w3
                pl.BlockSpec((f3, f4), rep),      # w4
                pl.BlockSpec((f4, f5), rep),      # w5
                pl.BlockSpec((5, fmax), rep),     # packed biases (f32)
            ],
            out_specs=pl.BlockSpec((batch_tile, f5), lambda i: (i, 0)),
        ),
        compiler_params=pltpu.CompilerParams(
            dimension_semantics=("parallel",)),
    )(x, w1, w2, w3, w4, w5, bias)

    return out[:B]


# ----------------------------------------------------------------------------------
# Synthetic init + pure-JAX reference
# ----------------------------------------------------------------------------------
def init_params(key, actor_input_dim, fc1_units=512, fc2_units=256,
                fc3_units=128, fc4_units=64, fc5_units=32):
    """Synthetic init mirroring reset_parameters():
       fc1..fc5 weights ~ U(-1/sqrt(out_features), +1/sqrt(out_features))
       (hidden_init uses weight.size()[0] == out_features for nn.Linear),
       biases use PyTorch's default U(-1/sqrt(in_features), +1/sqrt(in_features)).
       fc6 is unused by the default forward path and therefore omitted."""
    ks = jax.random.split(key, 10)

    def uni(k, shape, lim):
        return jax.random.uniform(k, shape, jnp.float32, -lim, lim)

    dims = [actor_input_dim, fc1_units, fc2_units, fc3_units, fc4_units, fc5_units]
    params = []
    for li in range(5):
        d_in, d_out = dims[li], dims[li + 1]
        w_lim = 1.0 / (d_out ** 0.5)   # hidden_init
        b_lim = 1.0 / (d_in ** 0.5)    # nn.Linear default bias init
        params.append(uni(ks[2 * li], (d_in, d_out), w_lim))       # weight (in, out)
        params.append(uni(ks[2 * li + 1], (1, d_out), b_lim))      # bias  (1, out)
    return tuple(params)


def _reference(x, params, compute_dtype=jnp.float32):
    """Pure-JAX reference mirroring the kernel's dtype strategy."""
    w1, b1, w2, b2, w3, b3, w4, b4, w5, b5 = params

    def dot(a, w):
        return jnp.dot(a.astype(compute_dtype), w.astype(compute_dtype),
                       preferred_element_type=jnp.float32,
                       precision=jax.lax.Precision.HIGHEST)

    def relu_cast(h):
        return jnp.maximum(h, 0.0).astype(compute_dtype)

    h = relu_cast(dot(x, w1) + b1)
    h = relu_cast(dot(h, w2) + b2)
    h = relu_cast(dot(h, w3) + b3)
    h = relu_cast(dot(h, w4) + b4)
    logits = dot(h, w5) + b5
    return jax.nn.softmax(logits, axis=-1)


if __name__ == "__main__":
    # TODO(synk): the use_batch_norm=True branch (BatchNorm1d before every layer + tanh
    # head through fc6) is not implemented; only the default (no-BN) forward path is.
    key = jax.random.PRNGKey(0)
    k_in, k_in2, k_par = jax.random.split(key, 3)

    batch = 40
    actor_input_dim = 48
    out_dim = 32  # fc5_units; the default path softmaxes fc5's output

    x = jax.random.normal(k_in, (batch, actor_input_dim), jnp.float32)
    params = init_params(k_par, actor_input_dim)

    # One-time parameter preparation (hoisted out of the per-call path).
    prepped_bf16 = prepare_params(params, compute_dtype=jnp.bfloat16)
    prepped_f32 = prepare_params(params, compute_dtype=jnp.float32)

    # 1) f32 MXU path, small ragged batch (exercises batch padding + 2-step grid).
    out_f32 = jax.block_until_ready(actor_mlp_v2_forward(x, prepped_f32))
    ref_f32 = _reference(x, params, compute_dtype=jnp.float32)
    assert out_f32.shape == (batch, out_dim)
    assert jnp.allclose(jnp.sum(out_f32, axis=-1), 1.0, atol=1e-5), "rows must sum to 1"
    assert jnp.allclose(out_f32, ref_f32, atol=1e-3, rtol=1e-2), "f32 mismatch vs reference"

    # 2) Default bf16 MXU path, checked against a reference using the same bf16 math.
    out_bf16 = jax.block_until_ready(actor_mlp_v2_forward(x, prepped_bf16))
    ref_bf16 = _reference(x, params, compute_dtype=jnp.bfloat16)
    assert out_bf16.shape == (batch, out_dim)
    assert jnp.allclose(jnp.sum(out_bf16, axis=-1), 1.0, atol=1e-5), "rows must sum to 1"
    assert jnp.allclose(out_bf16, ref_bf16, atol=2e-3, rtol=2e-2), "bf16 mismatch vs reference"

    # 3) Larger batch -> multi-step grid (tile capped at ceil(B/2): exercises pipelining
    #    and gives both v7x TensorCores work).
    x2 = jax.random.normal(k_in2, (512, actor_input_dim), jnp.float32)
    out2 = jax.block_until_ready(actor_mlp_v2_forward(x2, prepped_bf16, batch_tile=512))
    ref2 = _reference(x2, params, compute_dtype=jnp.bfloat16)
    assert out2.shape == (512, out_dim)
    assert jnp.allclose(out2, ref2, atol=2e-3, rtol=2e-2), "multi-tile mismatch vs reference"

    print("KERNEL_OK")
</pallas_src>

<mosaic_0001>
module attributes {stable_mosaic.version = 11 : i64} {
  func.func @_actor_mlp_kernel(%arg0: i32, %arg1: memref<32x48xf32, #tpu.memory_space<vmem>>, %arg2: memref<48x512xf32, #tpu.memory_space<vmem>>, %arg3: memref<512x256xf32, #tpu.memory_space<vmem>>, %arg4: memref<256x128xf32, #tpu.memory_space<vmem>>, %arg5: memref<128x64xf32, #tpu.memory_space<vmem>>, %arg6: memref<64x32xf32, #tpu.memory_space<vmem>>, %arg7: memref<5x512xf32, #tpu.memory_space<vmem>>, %arg8: memref<32x32xf32, #tpu.memory_space<vmem>>) attributes {dimension_semantics = [#tpu.dimension_semantics<parallel>], iteration_bounds = array<i64: 2>, scalar_prefetch = 0 : i64, scratch_operands = 0 : i64, tpu.core_type = #tpu.core_type<tc>, window_params = [{transform_indices = @transform_0, window_bounds = array<i64: 32, 48>}, {pipeline_mode = #tpu.pipeline_mode<synchronous>, transform_indices = @transform_1, window_bounds = array<i64: 48, 512>}, {pipeline_mode = #tpu.pipeline_mode<synchronous>, transform_indices = @transform_2, window_bounds = array<i64: 512, 256>}, {pipeline_mode = #tpu.pipeline_mode<synchronous>, transform_indices = @transform_3, window_bounds = array<i64: 256, 128>}, {pipeline_mode = #tpu.pipeline_mode<synchronous>, transform_indices = @transform_4, window_bounds = array<i64: 128, 64>}, {pipeline_mode = #tpu.pipeline_mode<synchronous>, transform_indices = @transform_5, window_bounds = array<i64: 64, 32>}, {pipeline_mode = #tpu.pipeline_mode<synchronous>, transform_indices = @transform_6, window_bounds = array<i64: 5, 512>}, {transform_indices = @transform_7, window_bounds = array<i64: 32, 32>}]} {
    %c0 = arith.constant 0 : index
    %c0_0 = arith.constant 0 : index
    %0 = vector.load %arg1[%c0, %c0_0] : memref<32x48xf32, #tpu.memory_space<vmem>>, vector<32x48xf32>
    %c0_1 = arith.constant 0 : index
    %c0_2 = arith.constant 0 : index
    %1 = vector.load %arg2[%c0_1, %c0_2] : memref<48x512xf32, #tpu.memory_space<vmem>>, vector<48x512xf32>
    %cst = arith.constant dense<0.000000e+00> : vector<32x512xf32>
    %2 = tpu.matmul %0, %1, %cst {dimension_numbers = #tpu.dot_dimension_numbers<[1], [0], [0], [1], [0, 0, 1, 1], [], []>} : vector<32x48xf32>, vector<48x512xf32>, vector<32x512xf32> -> vector<32x512xf32>
    %c0_3 = arith.constant 0 : index
    %c0_4 = arith.constant 0 : index
    %3 = vector.load %arg7[%c0_3, %c0_4] : memref<5x512xf32, #tpu.memory_space<vmem>>, vector<1x512xf32>
    %4 = vector.broadcast %3 : vector<1x512xf32> to vector<32x512xf32>
    %5 = arith.addf %2, %4 : vector<32x512xf32>
    %cst_5 = arith.constant 0.000000e+00 : f32
    %6 = vector.broadcast %cst_5 : f32 to vector<32x512xf32>
    %7 = arith.maximumf %5, %6 : vector<32x512xf32>
    %c0_6 = arith.constant 0 : index
    %c0_7 = arith.constant 0 : index
    %8 = vector.load %arg3[%c0_6, %c0_7] : memref<512x256xf32, #tpu.memory_space<vmem>>, vector<512x256xf32>
    %cst_8 = arith.constant dense<0.000000e+00> : vector<32x256xf32>
    %9 = tpu.matmul %7, %8, %cst_8 {dimension_numbers = #tpu.dot_dimension_numbers<[1], [0], [0], [1], [0, 0, 1, 1], [], []>} : vector<32x512xf32>, vector<512x256xf32>, vector<32x256xf32> -> vector<32x256xf32>
    %c1 = arith.constant 1 : index
    %c0_9 = arith.constant 0 : index
    %10 = vector.load %arg7[%c1, %c0_9] : memref<5x512xf32, #tpu.memory_space<vmem>>, vector<1x256xf32>
    %11 = vector.broadcast %10 : vector<1x256xf32> to vector<32x256xf32>
    %12 = arith.addf %9, %11 : vector<32x256xf32>
    %cst_10 = arith.constant 0.000000e+00 : f32
    %13 = vector.broadcast %cst_10 : f32 to vector<32x256xf32>
    %14 = arith.maximumf %12, %13 : vector<32x256xf32>
    %c0_11 = arith.constant 0 : index
    %c0_12 = arith.constant 0 : index
    %15 = vector.load %arg4[%c0_11, %c0_12] : memref<256x128xf32, #tpu.memory_space<vmem>>, vector<256x128xf32>
    %cst_13 = arith.constant dense<0.000000e+00> : vector<32x128xf32>
    %16 = tpu.matmul %14, %15, %cst_13 {dimension_numbers = #tpu.dot_dimension_numbers<[1], [0], [0], [1], [0, 0, 1, 1], [], []>} : vector<32x256xf32>, vector<256x128xf32>, vector<32x128xf32> -> vector<32x128xf32>
    %c2 = arith.constant 2 : index
    %c0_14 = arith.constant 0 : index
    %17 = vector.load %arg7[%c2, %c0_14] : memref<5x512xf32, #tpu.memory_space<vmem>>, vector<1x128xf32>
    %18 = vector.broadcast %17 : vector<1x128xf32> to vector<32x128xf32>
    %19 = arith.addf %16, %18 : vector<32x128xf32>
    %cst_15 = arith.constant 0.000000e+00 : f32
    %20 = vector.broadcast %cst_15 : f32 to vector<32x128xf32>
    %21 = arith.maximumf %19, %20 : vector<32x128xf32>
    %c0_16 = arith.constant 0 : index
    %c0_17 = arith.constant 0 : index
    %22 = vector.load %arg5[%c0_16, %c0_17] : memref<128x64xf32, #tpu.memory_space<vmem>>, vector<128x64xf32>
    %cst_18 = arith.constant dense<0.000000e+00> : vector<32x64xf32>
    %23 = tpu.matmul %21, %22, %cst_18 {dimension_numbers = #tpu.dot_dimension_numbers<[1], [0], [0], [1], [0, 0, 1, 1], [], []>} : vector<32x128xf32>, vector<128x64xf32>, vector<32x64xf32> -> vector<32x64xf32>
    %c3 = arith.constant 3 : index
    %c0_19 = arith.constant 0 : index
    %24 = vector.load %arg7[%c3, %c0_19] : memref<5x512xf32, #tpu.memory_space<vmem>>, vector<1x64xf32>
    %25 = vector.broadcast %24 : vector<1x64xf32> to vector<32x64xf32>
    %26 = arith.addf %23, %25 : vector<32x64xf32>
    %cst_20 = arith.constant 0.000000e+00 : f32
    %27 = vector.broadcast %cst_20 : f32 to vector<32x64xf32>
    %28 = arith.maximumf %26, %27 : vector<32x64xf32>
    %c0_21 = arith.constant 0 : index
    %c0_22 = arith.constant 0 : index
    %29 = vector.load %arg6[%c0_21, %c0_22] : memref<64x32xf32, #tpu.memory_space<vmem>>, vector<64x32xf32>
    %cst_23 = arith.constant dense<0.000000e+00> : vector<32x32xf32>
    %30 = tpu.matmul %28, %29, %cst_23 {dimension_numbers = #tpu.dot_dimension_numbers<[1], [0], [0], [1], [0, 0, 1, 1], [], []>} : vector<32x64xf32>, vector<64x32xf32>, vector<32x32xf32> -> vector<32x32xf32>
    %c4 = arith.constant 4 : index
    %c0_24 = arith.constant 0 : index
    %31 = vector.load %arg7[%c4, %c0_24] : memref<5x512xf32, #tpu.memory_space<vmem>>, vector<1x32xf32>
    %32 = vector.broadcast %31 : vector<1x32xf32> to vector<32x32xf32>
    %33 = arith.addf %30, %32 : vector<32x32xf32>
    %cst_25 = arith.constant dense<0xFF800000> : vector<32xf32>
    %34 = vector.multi_reduction <maximumf>, %33, %cst_25 [1] : vector<32x32xf32> to vector<32xf32>
    %35 = vector.shape_cast %34 : vector<32xf32> to vector<32x1xf32>
    %36 = vector.broadcast %35 : vector<32x1xf32> to vector<32x32xf32>
    %37 = arith.subf %33, %36 : vector<32x32xf32>
    %38 = math.exp %37 : vector<32x32xf32>
    %cst_26 = arith.constant dense<0.000000e+00> : vector<32xf32>
    %39 = vector.multi_reduction <add>, %38, %cst_26 [1] : vector<32x32xf32> to vector<32xf32>
    %40 = vector.shape_cast %39 : vector<32xf32> to vector<32x1xf32>
    %41 = tpu.reciprocal %40 : vector<32x1xf32> -> vector<32x1xf32>
    %42 = vector.broadcast %41 : vector<32x1xf32> to vector<32x32xf32>
    %43 = arith.mulf %38, %42 : vector<32x32xf32>
    %c0_27 = arith.constant 0 : index
    %c0_28 = arith.constant 0 : index
    %44 = vector.load %arg8[%c0_27, %c0_28] : memref<32x32xf32, #tpu.memory_space<vmem>>, vector<32x32xf32>
    tpu.vector_store %arg8[%c0_27, %c0_28], %43 {strides = array<i32>} : memref<32x32xf32, #tpu.memory_space<vmem>>, vector<32x32xf32>,
    return
  }
  func.func @transform_0(%arg0: i32) -> (i32, i32) {
    %c0_i32 = arith.constant 0 : i32
    %c0_i32_0 = arith.constant 0 : i32
    return %arg0, %c0_i32 : i32, i32
  }
  func.func @transform_1(%arg0: i32) -> (i32, i32) {
    %c0_i32 = arith.constant 0 : i32
    %c0_i32_0 = arith.constant 0 : i32
    %c0_i32_1 = arith.constant 0 : i32
    return %c0_i32, %c0_i32_0 : i32, i32
  }
  func.func @transform_2(%arg0: i32) -> (i32, i32) {
    %c0_i32 = arith.constant 0 : i32
    %c0_i32_0 = arith.constant 0 : i32
    %c0_i32_1 = arith.constant 0 : i32
    return %c0_i32, %c0_i32_0 : i32, i32
  }
  func.func @transform_3(%arg0: i32) -> (i32, i32) {
    %c0_i32 = arith.constant 0 : i32
    %c0_i32_0 = arith.constant 0 : i32
    %c0_i32_1 = arith.constant 0 : i32
    return %c0_i32, %c0_i32_0 : i32, i32
  }
  func.func @transform_4(%arg0: i32) -> (i32, i32) {
    %c0_i32 = arith.constant 0 : i32
    %c0_i32_0 = arith.constant 0 : i32
    %c0_i32_1 = arith.constant 0 : i32
    return %c0_i32, %c0_i32_0 : i32, i32
  }
  func.func @transform_5(%arg0: i32) -> (i32, i32) {
    %c0_i32 = arith.constant 0 : i32
    %c0_i32_0 = arith.constant 0 : i32
    %c0_i32_1 = arith.constant 0 : i32
    return %c0_i32, %c0_i32_0 : i32, i32
  }
  func.func @transform_6(%arg0: i32) -> (i32, i32) {
    %c0_i32 = arith.constant 0 : i32
    %c0_i32_0 = arith.constant 0 : i32
    %c0_i32_1 = arith.constant 0 : i32
    return %c0_i32, %c0_i32_0 : i32, i32
  }
  func.func @transform_7(%arg0: i32) -> (i32, i32) {
    %c0_i32 = arith.constant 0 : i32
    %c0_i32_0 = arith.constant 0 : i32
    return %arg0, %c0_i32 : i32, i32
  }
}

</mosaic_0001>

<bundles_post_ra>
// kernel: tpu_custom_call.1
= control target key start
LH: loop header
LB: loop body
LE: loop exit
PB: predicated region body
PF: predicated region fallthrough
CT: control target
= control target key end

     0   :  { %12 = vsyncpa [#allocation3], 0  ;;  %s1765_s0 = inlined_call_operand.vmem [shape: f32[64,48], index: 0, kind: input, shape index: {}]   ;;  %s1766_s1 = inlined_call_operand.vmem [shape: f32[48,512], index: 1, kind: input, shape index: {}]   ;;  %s1767_s2 = inlined_call_operand.hbm [shape: f32[512,256], index: 2, kind: input, shape index: {}]   ;;  %s1768_s3 = inlined_call_operand.hbm [shape: f32[256,128], index: 3, kind: input, shape index: {}]   ;;  %s1769_s4 = inlined_call_operand.vmem [shape: f32[128,64], index: 4, kind: input, shape index: {}]   ;;  %s1770_s5 = inlined_call_operand.vmem [shape: f32[64,32], index: 5, kind: input, shape index: {}]   ;;  %s1771_s6 = inlined_call_operand.vmem [shape: f32[5,512], index: 6, kind: input, shape index: {}]   ;;  %s1772_s7 = inlined_call_operand.vmem [shape: f32[64,32], index: 7, kind: output, shape index: {}]  }
   0x1   :  { %13 = vsyncpa [#allocation5], 0  ;;  %s1456_s24 = smov 0  }
   0x2 LB: > { %s216_s27 = sshll.u32 %s1767_s2, 4  ;;  %s1249_s28 = sadd.s32 4294967295, %s1408_s24   ;;  %s1408_s24 = sphi %s1456_s24, %s19_s24   ;;  %s217_s27 = int_to_ptr.hbm [resolvable:$true] %s216_s27 }
   0x3   : > { %p1251_p0 = scmp.ge.s32.totalorder %s1408_s24, 1  ;;  %p202_p1 = scmp.lt.s32.totalorder %s1408_s24, 3 }
   0x4   : > { %p1467_p2 = scmp.eq.s32.totalorder %s1249_s28, 0  ;;  %s1410_s8 = smov [#allocation2]  }
   0x5   : > { %p1471_p3 = pnand %p1251_p0, %p202_p1  ;;  %s218_s9 = sshll.u32 %s1410_s8, 4  ;;  %s219_s9 = int_to_ptr.vmem [resolvable:$true] %s218_s9 }
   0x6   : > { %s230_s12 = sshll.u32 %s1768_s3, 4  ;;  %s1411_s13 = smov [#allocation4]   ;;  %s231_s12 = int_to_ptr.hbm [resolvable:$true] %s230_s12 }
   0x7   : > { %p1293_p4 = pneg %p1471_p3  ;;  %s232_s14 = sshll.u32 %s1411_s13, 4  ;;  %s233_s14 = int_to_ptr.vmem [resolvable:$true] %s232_s14 }
   0x8   : > { %s1412_s15 = smov 256   ;;  %s1413_s16 = smov 16  }
   0x9   : > { %p1294_p5 = pnand %p1467_p2, %p1293_p4  ;;  %s1414_s17 = smov 128  }
   0xa   : > { %s1415_s18 = smov 8   ;;  %266 = sbr.rel (%p1471_p3) target bundleno = 1027 (0x403), region = 48 }
   0xb   : > { %1296 = dma.hbm_to_vmem [thread:$0]  (!%p1294_p5), %s217_s27, 16384, %s219_s9, [#allocation3], %s1412_s15, %s1412_s15, %s1413_s16  }
   0xc   : > { %1299 = dma.hbm_to_vmem [thread:$0]  (!%p1294_p5), %s231_s12, 4096, %s233_s14, [#allocation5], %s1414_s17, %s1414_s17, %s1415_s18  }
   0xf   : > { %1399 = dma.done.wait (%p1467_p2), [#allocation3], 16384  }
  0x10   : > { %1401 = vsyncadd (%p1467_p2), [#allocation3], 4294950912 }
  0x11   : > { %1403 = dma.done.wait (%p1467_p2), [#allocation5], 4096  }
  0x12   : > { %1405 = vsyncadd (%p1467_p2), [#allocation5], 4294963200  ;;  %s1258_s19 = sshll.u32 %s1249_s28, 2  ;;  %v340_v0 = vld [vmem:[%s1766_s1 + $0xa0] sm:$0xff]  ;;  %v341_v1 = vld [vmem:[%s1766_s1 + $0xa8] sm:$0xff]  ;;  %vm354_vm0 = vcmask 392192  }
  0x13   : > { %p305_p6 = scmp.lt.s32.totalorder %s1258_s19, 7  ;;  %v342_v2 = vld [vmem:[%s1766_s1 + $0xb0] sm:$0xff]  ;;  %377 = vmatpush.msra.mxu0 %v340_v0  ;;  %406 = vmatpush.msra.mxu1 %v341_v1  ;;  %v343_v3 = vld [vmem:[%s1766_s1 + $0xb8] sm:$0xff]  ;;  %v336_v4 = vld [vmem:[%s1766_s1 + $0x80] sm:$0xff]  ;;  %vm1028_vm1 = vcmask 523264   ;;  %vm1070_vm2 = vcmask 261120  }
  0x14   : > { %v337_v5 = vld [vmem:[%s1766_s1 + $0x88] sm:$0xff]  ;;  %435 = vmatpush.msra.mxu2 %v342_v2  ;;  %464 = vmatpush.msra.mxu3 %v343_v3  ;;  %v338_v6 = vld [vmem:[%s1766_s1 + $0x90] sm:$0xff]  ;;  %v339_v7 = vld [vmem:[%s1766_s1 + $0x98] sm:$0xff] }
  0x15   : > { %s1776_s19 = smov (!%p305_p6, %s1258_s19), 7  ;;  %v332_v8 = vld [vmem:[%s1766_s1 + $0x60] sm:$0xff]  ;;  %378 = vmatpush.msra.mxu0 %v336_v4  ;;  %407 = vmatpush.msra.mxu1 %v337_v5  ;;  %v333_v9 = vld [vmem:[%s1766_s1 + $0x68] sm:$0xff]  ;;  %v334_v10 = vld [vmem:[%s1766_s1 + $0x70] sm:$0xff] }
  0x16   : > { %v335_v11 = vld [vmem:[%s1766_s1 + $0x78] sm:$0xff]  ;;  %436 = vmatpush.msra.mxu2 %v338_v6  ;;  %465 = vmatpush.msra.mxu3 %v339_v7  ;;  %v328_v12 = vld [vmem:[%s1766_s1 + $0x40] sm:$0xff]  ;;  %v329_v13 = vld [vmem:[%s1766_s1 + $0x48] sm:$0xff]  ;;  %s1259_s29 = sshll.u32 %s1776_s19, 3 }
  0x17   : > { %379 = vmatpush.msra.mxu0 %v332_v8  ;;  %408 = vmatpush.msra.mxu1 %v333_v9  ;;  %v330_v14 = vld [vmem:[%s1766_s1 + $0x50] sm:$0xff]  ;;  %v331_v15 = vld [vmem:[%s1766_s1 + $0x58] sm:$0xff]  ;;  %v324_v16 = vld [vmem:[%s1766_s1 + $0x20] sm:$0xff]  ;;  %s1560_s21 = scalar_lea.vmem %s1765_s0, %s1259_s29  ;;  %s1750_s9 = scalar_lea.vmem %s1772_s7, %s1259_s29 }
  0x18   : > { %437 = vmatpush.msra.mxu2 %v334_v10  ;;  %466 = vmatpush.msra.mxu3 %v335_v11  ;;  %v325_v17 = vld [vmem:[%s1766_s1 + $0x28] sm:$0xff]  ;;  %v326_v18 = vld [vmem:[%s1766_s1 + $0x30] sm:$0xff]  ;;  %v327_v19 = vld [vmem:[%s1766_s1 + $0x38] sm:$0xff] }
  0x19   : > { %380 = vmatpush.msra.mxu0 %v328_v12  ;;  %409 = vmatpush.msra.mxu1 %v329_v13  ;;  %v320_v20 = vld [vmem:[%s1766_s1] sm:$0xff]  ;;  %v321_v21 = vld [vmem:[%s1766_s1 + $0x8] sm:$0xff]  ;;  %v322_v22 = vld [vmem:[%s1766_s1 + $0x10] sm:$0xff] }
  0x1a   : > { %438 = vmatpush.msra.mxu2 %v330_v14  ;;  %467 = vmatpush.msra.mxu3 %v331_v15  ;;  %v323_v23 = vld [vmem:[%s1766_s1 + $0x18] sm:$0xff]  ;;  %v316_v24 = vld [vmem:[%s1560_s21] sm:$0xff]  ;;  %v529_v25 = vld [vmem:[#allocation2 + $0xf0] sm:$0xff] }
  0x1b   : > { %381 = vmatpush.msra.mxu0 %v324_v16  ;;  %410 = vmatpush.msra.mxu1 %v325_v17  ;;  %v561_v26 = vld [vmem:[#allocation2 + $0x1f0] sm:$0xff]  ;;  %v527_v29 = vld [vmem:[#allocation2 + $0xe0] sm:$0xff]  ;;  %v317_v37 = vld [vmem:[%s1560_s21 + $0x8] sm:$0xff] }
  0x1c   : > { %439 = vmatpush.msra.mxu2 %v326_v18  ;;  %468 = vmatpush.msra.mxu3 %v327_v19  ;;  %v593_v27 = vld [vmem:[#allocation2 + $0x2f0] sm:$0xff]  ;;  %v559_v30 = vld [vmem:[#allocation2 + $0x1e0] sm:$0xff]  ;;  %v319_v63 = vld [vmem:[%s1560_s21 + $0x18] sm:$0xff] }
  0x1d   : > { %382 = vmatpush.msra.mxu0 %v320_v20  ;;  %411 = vmatpush.msra.mxu1 %v321_v21  ;;  %v625_v28 = vld [vmem:[#allocation2 + $0x3f0] sm:$0xff]  ;;  %v591_v31 = vld [vmem:[#allocation2 + $0x2e0] sm:$0xff] }
  0x1e   : > { %440 = vmatpush.msra.mxu2 %v322_v22  ;;  %469 = vmatpush.msra.mxu3 %v323_v23  ;;  %v623_v32 = vld [vmem:[#allocation2 + $0x3e0] sm:$0xff]  ;;  %v525_v33 = vld [vmem:[#allocation2 + $0xd0] sm:$0xff] }
  0x1f   : > { %1262 = vmatmul.msk.f32.vlgmr.msra.gmra.mxu0 %vm354_vm0, %v316_v24  ;;  %1266 = vmatmul.msk.f32.vlgmr.msra.gmra.mxu1 %vm354_vm0, %v316_v24  ;;  %v557_v34 = vld [vmem:[#allocation2 + $0x1d0] sm:$0xff]  ;;  %v523_v38 = vld [vmem:[#allocation2 + $0xc0] sm:$0xff] }
  0x20   : > { %1270 = vmatmul.msk.f32.vlgmr.msra.gmra.mxu2 %vm354_vm0, %v316_v24  ;;  %1274 = vmatmul.msk.f32.vlgmr.msra.gmra.mxu3 %vm354_vm0, %v316_v24  ;;  %v589_v35 = vld [vmem:[#allocation2 + $0x2d0] sm:$0xff]  ;;  %v555_v39 = vld [vmem:[#allocation2 + $0x1c0] sm:$0xff]  ;;  %v530_v24 = vld [vmem:[#allocation2 + $0xf8] sm:$0xff] }
  0x21   : > { %634 = vmatpush.msrb.mxu0 %v529_v25  ;;  %663 = vmatpush.msrb.mxu1 %v561_v26  ;;  %v621_v36 = vld [vmem:[#allocation2 + $0x3d0] sm:$0xff]  ;;  %v587_v40 = vld [vmem:[#allocation2 + $0x2c0] sm:$0xff]  ;;  %v562_v25 = vld [vmem:[#allocation2 + $0x1f8] sm:$0xff] }
  0x22   : > { %692 = vmatpush.msrb.mxu2 %v593_v27  ;;  %721 = vmatpush.msrb.mxu3 %v625_v28  ;;  %v619_v41 = vld [vmem:[#allocation2 + $0x3c0] sm:$0xff]  ;;  %v521_v42 = vld [vmem:[#allocation2 + $0xb0] sm:$0xff]  ;;  %v528_v28 = vld [vmem:[#allocation2 + $0xe8] sm:$0xff] }
  0x23   : > { %635 = vmatpush.msrb.mxu0 %v527_v29  ;;  %664 = vmatpush.msrb.mxu1 %v559_v30  ;;  %v553_v43 = vld [vmem:[#allocation2 + $0x1b0] sm:$0xff]  ;;  %v519_v46 = vld [vmem:[#allocation2 + $0xa0] sm:$0xff]  ;;  %v560_v29 = vld [vmem:[#allocation2 + $0x1e8] sm:$0xff] }
  0x24   : > { %693 = vmatpush.msrb.mxu2 %v591_v31  ;;  %722 = vmatpush.msrb.mxu3 %v623_v32  ;;  %v585_v44 = vld [vmem:[#allocation2 + $0x2b0] sm:$0xff]  ;;  %v551_v47 = vld [vmem:[#allocation2 + $0x1a0] sm:$0xff]  ;;  %v526_v32 = vld [vmem:[#allocation2 + $0xd8] sm:$0xff] }
  0x25   : > { %636 = vmatpush.msrb.mxu0 %v525_v33  ;;  %665 = vmatpush.msrb.mxu1 %v557_v34  ;;  %v617_v45 = vld [vmem:[#allocation2 + $0x3b0] sm:$0xff]  ;;  %v583_v48 = vld [vmem:[#allocation2 + $0x2a0] sm:$0xff]  ;;  %v558_v33 = vld [vmem:[#allocation2 + $0x1d8] sm:$0xff] }
  0x26   : > { %694 = vmatpush.msrb.mxu2 %v589_v35  ;;  %723 = vmatpush.msrb.mxu3 %v621_v36  ;;  %v615_v49 = vld [vmem:[#allocation2 + $0x3a0] sm:$0xff]  ;;  %v318_v50 = vld [vmem:[%s1560_s21 + $0x10] sm:$0xff]  ;;  %v594_v34 = vld [vmem:[#allocation2 + $0x2f8] sm:$0xff] }
  0x27   : > { %1263 = vmatmul.msk.f32.gmra.mxu0 %vm354_vm0, %v317_v37  ;;  %1267 = vmatmul.msk.f32.gmra.mxu1 %vm354_vm0, %v317_v37  ;;  %v517_v51 = vld [vmem:[#allocation2 + $0x90] sm:$0xff]  ;;  %v515_v55 = vld [vmem:[#allocation2 + $0x80] sm:$0xff]  ;;  %v524_v35 = vld [vmem:[#allocation2 + $0xc8] sm:$0xff] }
  0x28   : > { %1271 = vmatmul.msk.f32.gmra.mxu2 %vm354_vm0, %v317_v37  ;;  %1275 = vmatmul.msk.f32.gmra.mxu3 %vm354_vm0, %v317_v37  ;;  %v549_v52 = vld [vmem:[#allocation2 + $0x190] sm:$0xff]  ;;  %v547_v56 = vld [vmem:[#allocation2 + $0x180] sm:$0xff]  ;;  %v556_v36 = vld [vmem:[#allocation2 + $0x1c8] sm:$0xff] }
  0x29   : > { %637 = vmatpush.msrb.mxu0 %v523_v38  ;;  %666 = vmatpush.msrb.mxu1 %v555_v39  ;;  %v581_v53 = vld [vmem:[#allocation2 + $0x290] sm:$0xff]  ;;  %v579_v57 = vld [vmem:[#allocation2 + $0x280] sm:$0xff]  ;;  %v626_v37 = vld [vmem:[#allocation2 + $0x3f8] sm:$0xff] }
  0x2a   : > { %695 = vmatpush.msrb.mxu2 %v587_v40  ;;  %724 = vmatpush.msrb.mxu3 %v619_v41  ;;  %v613_v54 = vld [vmem:[#allocation2 + $0x390] sm:$0xff]  ;;  %v611_v58 = vld [vmem:[#allocation2 + $0x380] sm:$0xff]  ;;  %v592_v38 = vld [vmem:[#allocation2 + $0x2e8] sm:$0xff] }
  0x2b   : > { %638 = vmatpush.msrb.mxu0 %v521_v42  ;;  %667 = vmatpush.msrb.mxu1 %v553_v43  ;;  %v513_v59 = vld [vmem:[#allocation2 + $0x70] sm:$0xff]  ;;  %v511_v0 = vld [vmem:[#allocation2 + $0x60] sm:$0xff]  ;;  %v522_v39 = vld [vmem:[#allocation2 + $0xb8] sm:$0xff] }
  0x2c   : > { %696 = vmatpush.msrb.mxu2 %v585_v44  ;;  %725 = vmatpush.msrb.mxu3 %v617_v45  ;;  %v545_v60 = vld [vmem:[#allocation2 + $0x170] sm:$0xff]  ;;  %v543_v1 = vld [vmem:[#allocation2 + $0x160] sm:$0xff]  ;;  %v554_v40 = vld [vmem:[#allocation2 + $0x1b8] sm:$0xff] }
  0x2d   : > { %639 = vmatpush.msrb.mxu0 %v519_v46  ;;  %668 = vmatpush.msrb.mxu1 %v551_v47  ;;  %v577_v61 = vld [vmem:[#allocation2 + $0x270] sm:$0xff]  ;;  %v575_v2 = vld [vmem:[#allocation2 + $0x260] sm:$0xff]  ;;  %v624_v41 = vld [vmem:[#allocation2 + $0x3e8] sm:$0xff] }
  0x2e   : > { %697 = vmatpush.msrb.mxu2 %v583_v48  ;;  %726 = vmatpush.msrb.mxu3 %v615_v49  ;;  %v609_v62 = vld [vmem:[#allocation2 + $0x370] sm:$0xff]  ;;  %v607_v3 = vld [vmem:[#allocation2 + $0x360] sm:$0xff]  ;;  %v590_v42 = vld [vmem:[#allocation2 + $0x2d8] sm:$0xff] }
  0x2f   : > { %1264 = vmatmul.msk.f32.gmra.mxu0 %vm354_vm0, %v318_v50  ;;  %1268 = vmatmul.msk.f32.gmra.mxu1 %vm354_vm0, %v318_v50  ;;  %v509_v4 = vld [vmem:[#allocation2 + $0x50] sm:$0xff]  ;;  %v507_v7 = vld [vmem:[#allocation2 + $0x40] sm:$0xff]  ;;  %v520_v43 = vld [vmem:[#allocation2 + $0xa8] sm:$0xff] }
  0x30   : > { %1272 = vmatmul.msk.f32.gmra.mxu2 %vm354_vm0, %v318_v50  ;;  %1276 = vmatmul.msk.f32.gmra.mxu3 %vm354_vm0, %v318_v50  ;;  %v541_v5 = vld [vmem:[#allocation2 + $0x150] sm:$0xff]  ;;  %v539_v8 = vld [vmem:[#allocation2 + $0x140] sm:$0xff]  ;;  %v552_v44 = vld [vmem:[#allocation2 + $0x1a8] sm:$0xff] }
  0x31   : > { %640 = vmatpush.msrb.mxu0 %v517_v51  ;;  %669 = vmatpush.msrb.mxu1 %v549_v52  ;;  %v573_v6 = vld [vmem:[#allocation2 + $0x250] sm:$0xff]  ;;  %v503_v11 = vld [vmem:[#allocation2 + $0x20] sm:$0xff]  ;;  %v622_v45 = vld [vmem:[#allocation2 + $0x3d8] sm:$0xff] }
  0x32   : > { %698 = vmatpush.msrb.mxu2 %v581_v53  ;;  %727 = vmatpush.msrb.mxu3 %v613_v54  ;;  %v505_v9 = vld [vmem:[#allocation2 + $0x30] sm:$0xff]  ;;  %v535_v12 = vld [vmem:[#allocation2 + $0x120] sm:$0xff]  ;;  %v588_v46 = vld [vmem:[#allocation2 + $0x2c8] sm:$0xff] }
  0x33   : > { %641 = vmatpush.msrb.mxu0 %v515_v55  ;;  %670 = vmatpush.msrb.mxu1 %v547_v56  ;;  %v537_v10 = vld [vmem:[#allocation2 + $0x130] sm:$0xff]  ;;  %v571_v14 = vld [vmem:[#allocation2 + $0x240] sm:$0xff]  ;;  %v518_v47 = vld [vmem:[#allocation2 + $0x98] sm:$0xff] }
  0x34   : > { %699 = vmatpush.msrb.mxu2 %v579_v57  ;;  %728 = vmatpush.msrb.mxu3 %v611_v58  ;;  %v605_v13 = vld [vmem:[#allocation2 + $0x350] sm:$0xff]  ;;  %v603_v17 = vld [vmem:[#allocation2 + $0x340] sm:$0xff]  ;;  %v550_v48 = vld [vmem:[#allocation2 + $0x198] sm:$0xff] }
  0x35   : > { %642 = vmatpush.msrb.mxu0 %v513_v59  ;;  %671 = vmatpush.msrb.mxu1 %v545_v60  ;;  %v501_v15 = vld [vmem:[#allocation2 + $0x10] sm:$0xff]  ;;  %v499_v19 = vld [vmem:[#allocation2] sm:$0xff]  ;;  %v620_v49 = vld [vmem:[#allocation2 + $0x3c8] sm:$0xff] }
  0x36   : > { %700 = vmatpush.msrb.mxu2 %v577_v61  ;;  %729 = vmatpush.msrb.mxu3 %v609_v62  ;;  %v533_v16 = vld [vmem:[#allocation2 + $0x110] sm:$0xff]  ;;  %v531_v20 = vld [vmem:[#allocation2 + $0x100] sm:$0xff]  ;;  %v586_v50 = vld [vmem:[#allocation2 + $0x2b8] sm:$0xff] }
  0x37   : > { %1265 = vmatmul.msk.f32.gmra.mxu0 %vm354_vm0, %v319_v63  ;;  %1269 = vmatmul.msk.f32.gmra.mxu1 %vm354_vm0, %v319_v63  ;;  %v569_v18 = vld [vmem:[#allocation2 + $0x230] sm:$0xff]  ;;  %v567_v22 = vld [vmem:[#allocation2 + $0x220] sm:$0xff]  ;;  %v516_v51 = vld [vmem:[#allocation2 + $0x88] sm:$0xff] }
  0x38   : > { %1273 = vmatmul.msk.f32.gmra.mxu2 %vm354_vm0, %v319_v63  ;;  %1277 = vmatmul.msk.f32.gmra.mxu3 %vm354_vm0, %v319_v63  ;;  %v601_v21 = vld [vmem:[#allocation2 + $0x330] sm:$0xff]  ;;  %v599_v23 = vld [vmem:[#allocation2 + $0x320] sm:$0xff]  ;;  %v548_v52 = vld [vmem:[#allocation2 + $0x188] sm:$0xff] }
  0x39   : > { %643 = vmatpush.msrb.mxu0 %v511_v0  ;;  %672 = vmatpush.msrb.mxu1 %v543_v1  ;;  %v565_v26 = vld [vmem:[#allocation2 + $0x210] sm:$0xff]  ;;  %v563_v30 = vld [vmem:[#allocation2 + $0x200] sm:$0xff]  ;;  %v618_v53 = vld [vmem:[#allocation2 + $0x3b8] sm:$0xff] }
  0x3a   : > { %701 = vmatpush.msrb.mxu2 %v575_v2  ;;  %730 = vmatpush.msrb.mxu3 %v607_v3  ;;  %v597_v27 = vld [vmem:[#allocation2 + $0x310] sm:$0xff]  ;;  %v595_v31 = vld [vmem:[#allocation2 + $0x300] sm:$0xff]  ;;  %v584_v54 = vld [vmem:[#allocation2 + $0x2a8] sm:$0xff] }
  0x3b   : > { %644 = vmatpush.msrb.mxu0 %v509_v4  ;;  %673 = vmatpush.msrb.mxu1 %v541_v5  ;;  %v514_v55 = vld [vmem:[#allocation2 + $0x78] sm:$0xff]  ;;  %v616_v57 = vld [vmem:[#allocation2 + $0x3a8] sm:$0xff] }
  0x3c   : > { %702 = vmatpush.msrb.mxu2 %v573_v6  ;;  %731 = vmatpush.msrb.mxu3 %v605_v13  ;;  %v546_v56 = vld [vmem:[#allocation2 + $0x178] sm:$0xff]  ;;  %v512_v59 = vld [vmem:[#allocation2 + $0x68] sm:$0xff] }
  0x3d   : > { %645 = vmatpush.msrb.mxu0 %v507_v7  ;;  %674 = vmatpush.msrb.mxu1 %v539_v8  ;;  %v582_v58 = vld [vmem:[#allocation2 + $0x298] sm:$0xff]  ;;  %v544_v60 = vld [vmem:[#allocation2 + $0x168] sm:$0xff] }
  0x3e   : > { %703 = vmatpush.msrb.mxu2 %v571_v14  ;;  %732 = vmatpush.msrb.mxu3 %v603_v17  ;;  %v344_v61 = vld [vmem:[%s1771_s6] ss:$8 sm:$0xf] }
  0x3f   : > { %646 = vmatpush.msrb.mxu0 %v505_v9  ;;  %675 = vmatpush.msrb.mxu1 %v537_v10  ;;  %v614_v62 = vld [vmem:[#allocation2 + $0x398] sm:$0xff]  ;;  %v580_v63 = vld [vmem:[#allocation2 + $0x288] sm:$0xff]  ;;  %v1597_v6 = vperm.slane %v344_v61, 0  ;;  %v1599_v7 = vperm.slane %v344_v61, 1 }
  0x40   : > { %704 = vmatpush.msrb.mxu2 %v569_v18  ;;  %733 = vmatpush.msrb.mxu3 %v601_v21  ;;  %v510_v0 = vld [vmem:[#allocation2 + $0x58] sm:$0xff]  ;;  %v612_v2 = vld [vmem:[#allocation2 + $0x388] sm:$0xff] }
  0x41   : > { %647 = vmatpush.msrb.mxu0 %v503_v11  ;;  %676 = vmatpush.msrb.mxu1 %v535_v12  ;;  %v542_v1 = vld [vmem:[#allocation2 + $0x158] sm:$0xff]  ;;  %v508_v4 = vld [vmem:[#allocation2 + $0x48] sm:$0xff] }
  0x42   : > { %705 = vmatpush.msrb.mxu2 %v567_v22  ;;  %734 = vmatpush.msrb.mxu3 %v599_v23  ;;  %v578_v3 = vld [vmem:[#allocation2 + $0x278] sm:$0xff]  ;;  %v540_v5 = vld [vmem:[#allocation2 + $0x148] sm:$0xff] }
  0x43   : > { %648 = vmatpush.msrb.mxu0 %v501_v15  ;;  %677 = vmatpush.msrb.mxu1 %v533_v16  ;;  %v610_v8 = vld [vmem:[#allocation2 + $0x378] sm:$0xff]  ;;  %v576_v9 = vld [vmem:[#allocation2 + $0x268] sm:$0xff] }
  0x44   : > { %706 = vmatpush.msrb.mxu2 %v565_v26  ;;  %735 = vmatpush.msrb.mxu3 %v597_v27  ;;  %v506_v10 = vld [vmem:[#allocation2 + $0x38] sm:$0xff]  ;;  %v608_v12 = vld [vmem:[#allocation2 + $0x368] sm:$0xff]  ;;  %v1609_v27 = vperm.slane %v344_v61, 2 }
  0x45   : > { %649 = vmatpush.msrb.mxu0 %v499_v19  ;;  %678 = vmatpush.msrb.mxu1 %v531_v20  ;;  %v538_v11 = vld [vmem:[#allocation2 + $0x138] sm:$0xff]  ;;  %v504_v16 = vld [vmem:[#allocation2 + $0x28] sm:$0xff] }
  0x46   : > { %707 = vmatpush.msrb.mxu2 %v563_v30  ;;  %736 = vmatpush.msrb.mxu3 %v595_v31  ;;  %v574_v15 = vld [vmem:[#allocation2 + $0x258] sm:$0xff]  ;;  %v536_v17 = vld [vmem:[#allocation2 + $0x128] sm:$0xff] }
  0x47   : > { %750 = vmatpush.msra.mxu0 %v530_v24  ;;  %779 = vmatpush.msra.mxu1 %v562_v25  ;;  %v606_v20 = vld [vmem:[#allocation2 + $0x358] sm:$0xff]  ;;  %v572_v21 = vld [vmem:[#allocation2 + $0x248] sm:$0xff] }
  0x48   : > { %808 = vmatpush.msra.mxu2 %v594_v34  ;;  %837 = vmatpush.msra.mxu3 %v626_v37  ;;  %v502_v22 = vld [vmem:[#allocation2 + $0x18] sm:$0xff]  ;;  %v604_v26 = vld [vmem:[#allocation2 + $0x348] sm:$0xff] }
  0x49   : > { %751 = vmatpush.msra.mxu0 %v528_v28  ;;  %780 = vmatpush.msra.mxu1 %v560_v29  ;;  %v534_v23 = vld [vmem:[#allocation2 + $0x118] sm:$0xff]  ;;  %v1611_v28 = vperm.slane %v344_v61, 3  ;;  %v500_v30 = vld [vmem:[#allocation2 + $0x8] sm:$0xff] }
  0x4a   : > { %809 = vmatpush.msra.mxu2 %v592_v38  ;;  %838 = vmatpush.msra.mxu3 %v624_v41  ;;  %v570_v29 = vld [vmem:[#allocation2 + $0x238] sm:$0xff]  ;;  %v532_v31 = vld [vmem:[#allocation2 + $0x108] sm:$0xff] }
  0x4b   : > { %752 = vmatpush.msra.mxu0 %v526_v32  ;;  %781 = vmatpush.msra.mxu1 %v558_v33  ;;  %v602_v32 = vld [vmem:[#allocation2 + $0x338] sm:$0xff]  ;;  %v568_v33 = vld [vmem:[#allocation2 + $0x228] sm:$0xff] }
  0x4c   : > { %810 = vmatpush.msra.mxu2 %v590_v42  ;;  %839 = vmatpush.msra.mxu3 %v622_v45  ;;  %v600_v34 = vld [vmem:[#allocation2 + $0x328] sm:$0xff]  ;;  %v566_v37 = vld [vmem:[#allocation2 + $0x218] sm:$0xff] }
  0x4d   : > { %753 = vmatpush.msra.mxu0 %v524_v35  ;;  %782 = vmatpush.msra.mxu1 %v556_v36  ;;  %v598_v42 = vld [vmem:[#allocation2 + $0x318] sm:$0xff] }
  0x4e   : > { %811 = vmatpush.msra.mxu2 %v588_v46  ;;  %840 = vmatpush.msra.mxu3 %v620_v49  ;;  %v564_v49 = vld [vmem:[#allocation2 + $0x208] sm:$0xff] }
  0x4f   : > { %754 = vmatpush.msra.mxu0 %v522_v39  ;;  %783 = vmatpush.msra.mxu1 %v554_v40 }
  0x50   : > { %812 = vmatpush.msra.mxu2 %v586_v50  ;;  %841 = vmatpush.msra.mxu3 %v618_v53  ;;  %v596_v50 = vld [vmem:[#allocation2 + $0x308] sm:$0xff] }
  0x51   : > { %755 = vmatpush.msra.mxu0 %v520_v43  ;;  %784 = vmatpush.msra.mxu1 %v552_v44 }
  0x52   : > { %813 = vmatpush.msra.mxu2 %v584_v54  ;;  %842 = vmatpush.msra.mxu3 %v616_v57 }
  0x53   : > { %756 = vmatpush.msra.mxu0 %v518_v47  ;;  %785 = vmatpush.msra.mxu1 %v550_v48 }
  0x54   : > { %814 = vmatpush.msra.mxu2 %v582_v58  ;;  %843 = vmatpush.msra.mxu3 %v614_v62 }
  0x55   : > { %757 = vmatpush.msra.mxu0 %v516_v51  ;;  %786 = vmatpush.msra.mxu1 %v548_v52 }
  0x56   : > { %815 = vmatpush.msra.mxu2 %v580_v63  ;;  %844 = vmatpush.msra.mxu3 %v612_v2 }
  0x57   : > { %758 = vmatpush.msra.mxu0 %v514_v55  ;;  %787 = vmatpush.msra.mxu1 %v546_v56 }
  0x58   : > { %816 = vmatpush.msra.mxu2 %v578_v3  ;;  %845 = vmatpush.msra.mxu3 %v610_v8 }
  0x59   : > { %759 = vmatpush.msra.mxu0 %v512_v59  ;;  %788 = vmatpush.msra.mxu1 %v544_v60 }
  0x5a   : > { %817 = vmatpush.msra.mxu2 %v576_v9  ;;  %846 = vmatpush.msra.mxu3 %v608_v12 }
  0x5b   : > { %760 = vmatpush.msra.mxu0 %v510_v0  ;;  %789 = vmatpush.msra.mxu1 %v542_v1 }
  0x5c   : > { %818 = vmatpush.msra.mxu2 %v574_v15  ;;  %847 = vmatpush.msra.mxu3 %v606_v20 }
  0x5d   : > { %761 = vmatpush.msra.mxu0 %v508_v4  ;;  %790 = vmatpush.msra.mxu1 %v540_v5 }
  0x5e   : > { %819 = vmatpush.msra.mxu2 %v572_v21  ;;  %848 = vmatpush.msra.mxu3 %v604_v26  ;;  %v887_v21 = vld [vmem:[#allocation4 + $0x68] sm:$0xff]  ;;  %v884_v26 = vld [vmem:[#allocation4 + $0x50] sm:$0xff] }
  0x5f   : > { %762 = vmatpush.msra.mxu0 %v506_v10  ;;  %791 = vmatpush.msra.mxu1 %v538_v11 }
  0x60   : > { %820 = vmatpush.msra.mxu2 %v570_v29  ;;  %849 = vmatpush.msra.mxu3 %v602_v32  ;;  %v877_v29 = vld [vmem:[#allocation4 + $0x18] sm:$0xff]  ;;  %v874_v32 = vld [vmem:[#allocation4] sm:$0xff] }
  0x61   : > { %763 = vmatpush.msra.mxu0 %v504_v16  ;;  %792 = vmatpush.msra.mxu1 %v536_v17 }
  0x62   : > { %821 = vmatpush.msra.mxu2 %v568_v33  ;;  %850 = vmatpush.msra.mxu3 %v600_v34  ;;  %v905_v33 = vld [vmem:[#allocation4 + $0xf8] sm:$0xff]  ;;  %v904_v34 = vld [vmem:[#allocation4 + $0xf0] sm:$0xff] }
  0x63   : > { %764 = vmatpush.msra.mxu0 %v502_v22  ;;  %793 = vmatpush.msra.mxu1 %v534_v23  ;;  %v886_v22 = vld [vmem:[#allocation4 + $0x60] sm:$0xff]  ;;  %v885_v23 = vld [vmem:[#allocation4 + $0x58] sm:$0xff] }
  0x64   : > { %822 = vmatpush.msra.mxu2 %v566_v37  ;;  %851 = vmatpush.msra.mxu3 %v598_v42  ;;  %v901_v37 = vld [vmem:[#allocation4 + $0xd8] sm:$0xff]  ;;  %v899_v42 = vld [vmem:[#allocation4 + $0xc8] sm:$0xff] }
  0x65   : > { %765 = vmatpush.msra.mxu0 %v500_v30  ;;  %794 = vmatpush.msra.mxu1 %v532_v31  ;;  %v876_v30 = vld [vmem:[#allocation4 + $0x10] sm:$0xff]  ;;  %v875_v31 = vld [vmem:[#allocation4 + $0x8] sm:$0xff] }
  0x66   : > { %823 = vmatpush.msra.mxu2 %v564_v49  ;;  %852 = vmatpush.msra.mxu3 %v596_v50  ;;  %v895_v50 = vld [vmem:[#allocation4 + $0xa8] sm:$0xff] }
  0x9c   : > { %v384_v13 = vpop.f32.mrf.mxu0  ;;  %v413_v14 = vpop.f32.mrf.mxu1 }
  0x9d   : > { %v1602_v18 = vadd.f32 %v384_v13, %v1597_v6  ;;  %v1605_v19 = vadd.f32 %v413_v14, %v1599_v7 }
  0x9f   : > { %v483_v24 = vmax.f32 %v1602_v18, 0.0  ;;  %v484_v25 = vmax.f32 %v1605_v19, 0.0  ;;  %v883_v18 = vld [vmem:[#allocation4 + $0x48] sm:$0xff]  ;;  %v882_v19 = vld [vmem:[#allocation4 + $0x40] sm:$0xff] }
  0xa1   : > { %650 = vmatmul.f32.vlgmr.msrb.gmra.mxu0 %v483_v24  ;;  %679 = vmatmul.f32.vlgmr.msrb.gmra.mxu1 %v484_v25 }
  0xa2   : > { %936 = vmatpush.msrb.mxu1 %v905_v33 }
  0xa3   : > { %v442_v35 = vpop.f32.mrf.mxu2  ;;  %v471_v36 = vpop.f32.mrf.mxu3 }
  0xa4   : > { %v1618_v38 = vadd.f32 %v442_v35, %v1609_v27  ;;  %v1621_v39 = vadd.f32 %v471_v36, %v1611_v28  ;;  %v387_v40 = vpop.f32.mrf.mxu0  ;;  %v416_v41 = vpop.f32.mrf.mxu1  ;;  %937 = vmatpush.msrb.mxu1 %v904_v34  ;;  %v903_v35 = vld [vmem:[#allocation4 + $0xe8] sm:$0xff]  ;;  %v902_v36 = vld [vmem:[#allocation4 + $0xe0] sm:$0xff] }
  0xa5   : > { %v1624_v43 = vadd.f32 %v387_v40, %v1597_v6  ;;  %v1627_v44 = vadd.f32 %v416_v41, %v1599_v7 }
  0xa6   : > { %v485_v45 = vmax.f32 %v1618_v38, 0.0  ;;  %v486_v46 = vmax.f32 %v1621_v39, 0.0  ;;  %938 = vmatpush.msrb.mxu1 %v903_v35  ;;  %v900_v38 = vld [vmem:[#allocation4 + $0xd0] sm:$0xff]  ;;  %v1278_v39 = vld [vmem:[%s1771_s6 + $0x1] ss:$8 sm:$0x3] }
  0xa7   : > { %v487_v47 = vmax.f32 %v1624_v43, 0.0  ;;  %v488_v48 = vmax.f32 %v1627_v44, 0.0  ;;  %v630_v43 = vperm.slane %v1278_v39, 0  ;;  %v898_v44 = vld [vmem:[#allocation4 + $0xc0] sm:$0xff] }
  0xa8   : > { %708 = vmatmul.f32.vlgmr.msrb.gmra.mxu2 %v485_v45  ;;  %737 = vmatmul.f32.vlgmr.msrb.gmra.mxu3 %v486_v46 }
  0xa9   : > { %653 = vmatmul.f32.gmra.mxu0 %v487_v47  ;;  %682 = vmatmul.f32.gmra.mxu1 %v488_v48 }
  0xaa   : > { %939 = vmatpush.msrb.mxu1 %v902_v36 }
  0xab   : > { %v445_v51 = vpop.f32.mrf.mxu2  ;;  %v474_v52 = vpop.f32.mrf.mxu3 }
  0xac   : > { %v446_v53 = vadd.f32 %v445_v51, %v1609_v27  ;;  %v475_v54 = vadd.f32 %v474_v52, %v1611_v28  ;;  %v390_v55 = vpop.f32.mrf.mxu0  ;;  %v419_v56 = vpop.f32.mrf.mxu1  ;;  %940 = vmatpush.msrb.mxu1 %v901_v37  ;;  %v894_v52 = vld [vmem:[#allocation4 + $0xa0] sm:$0xff] }
  0xad   : > { %v391_v57 = vadd.f32 %v390_v55, %v1597_v6  ;;  %v420_v58 = vadd.f32 %v419_v56, %v1599_v7 }
  0xae   : > { %v489_v59 = vmax.f32 %v446_v53, 0.0  ;;  %v490_v60 = vmax.f32 %v475_v54, 0.0  ;;  %941 = vmatpush.msrb.mxu1 %v900_v38  ;;  %v893_v53 = vld [vmem:[#allocation4 + $0x98] sm:$0xff] }
  0xaf   : > { %v491_v61 = vmax.f32 %v391_v57, 0.0  ;;  %v492_v62 = vmax.f32 %v420_v58, 0.0  ;;  %v892_v58 = vld [vmem:[#allocation4 + $0x90] sm:$0xff] }
  0xb0   : > { %711 = vmatmul.f32.gmra.mxu2 %v489_v59  ;;  %740 = vmatmul.f32.gmra.mxu3 %v490_v60 }
  0xb1   : > { %656 = vmatmul.f32.gmra.mxu0 %v491_v61  ;;  %685 = vmatmul.f32.gmra.mxu1 %v492_v62 }
  0xb2   : > { %942 = vmatpush.msrb.mxu1 %v899_v42 }
  0xb3   : > { %v448_v63 = vpop.f32.mrf.mxu2  ;;  %v477_v0 = vpop.f32.mrf.mxu3 }
  0xb4   : > { %v449_v1 = vadd.f32 %v448_v63, %v1609_v27  ;;  %v478_v2 = vadd.f32 %v477_v0, %v1611_v28  ;;  %v393_v3 = vpop.f32.mrf.mxu0  ;;  %v422_v4 = vpop.f32.mrf.mxu1  ;;  %943 = vmatpush.msrb.mxu1 %v898_v44 }
  0xb5   : > { %v394_v5 = vadd.f32 %v393_v3, %v1597_v6  ;;  %v423_v8 = vadd.f32 %v422_v4, %v1599_v7  ;;  %v889_v6 = vld [vmem:[#allocation4 + $0x78] sm:$0xff]  ;;  %v888_v7 = vld [vmem:[#allocation4 + $0x70] sm:$0xff] }
  0xb6   : > { %v493_v9 = vmax.f32 %v449_v1, 0.0  ;;  %v494_v10 = vmax.f32 %v478_v2, 0.0  ;;  %907 = vmatpush.msrb.mxu0 %v889_v6  ;;  %v890_v1 = vld [vmem:[#allocation4 + $0x80] sm:$0xff] }
  0xb7   : > { %v495_v11 = vmax.f32 %v394_v5, 0.0  ;;  %v496_v12 = vmax.f32 %v423_v8, 0.0 }
  0xb8   : > { %714 = vmatmul.f32.gmra.mxu2 %v493_v9  ;;  %743 = vmatmul.f32.gmra.mxu3 %v494_v10 }
  0xb9   : > { %659 = vmatmul.f32.gmra.mxu0 %v495_v11  ;;  %688 = vmatmul.f32.gmra.mxu1 %v496_v12 }
  0xba   : > { %908 = vmatpush.msrb.mxu0 %v888_v7 }
  0xbb   : > { %v451_v13 = vpop.f32.mrf.mxu2  ;;  %v480_v14 = vpop.f32.mrf.mxu3 }
  0xbc   : > { %v452_v15 = vadd.f32 %v451_v13, %v1609_v27  ;;  %v481_v16 = vadd.f32 %v480_v14, %v1611_v28  ;;  %909 = vmatpush.msrb.mxu0 %v887_v21  ;;  %v879_v27 = vld [vmem:[#allocation4 + $0x28] sm:$0xff]  ;;  %v878_v28 = vld [vmem:[#allocation4 + $0x20] sm:$0xff]  ;;  %v631_v21 = vperm.slane %v1278_v39, 1 }
  0xbe   : > { %v497_v17 = vmax.f32 %v452_v15, 0.0  ;;  %v498_v20 = vmax.f32 %v481_v16, 0.0  ;;  %910 = vmatpush.msrb.mxu0 %v886_v22 }
  0xc0   : > { %717 = vmatmul.f32.gmra.mxu2 %v497_v17  ;;  %746 = vmatmul.f32.gmra.mxu3 %v498_v20 }
  0xc1   : > { %766 = vmatmul.f32.vlgmr.msra.gmra.mxu0 %v483_v24  ;;  %795 = vmatmul.f32.vlgmr.msra.gmra.mxu1 %v484_v25  ;;  %v881_v24 = vld [vmem:[#allocation4 + $0x38] sm:$0xff]  ;;  %v880_v25 = vld [vmem:[#allocation4 + $0x30] sm:$0xff] }
  0xc2   : > { %911 = vmatpush.msrb.mxu0 %v885_v23 }
  0xc4   : > { %912 = vmatpush.msrb.mxu0 %v884_v26 }
  0xc6   : > { %913 = vmatpush.msrb.mxu0 %v883_v18 }
  0xc8   : > { %824 = vmatmul.f32.vlgmr.msra.gmra.mxu2 %v485_v45  ;;  %853 = vmatmul.f32.vlgmr.msra.gmra.mxu3 %v486_v46  ;;  %v897_v45 = vld [vmem:[#allocation4 + $0xb8] sm:$0xff] }
  0xc9   : > { %769 = vmatmul.f32.gmra.mxu0 %v487_v47  ;;  %798 = vmatmul.f32.gmra.mxu1 %v488_v48  ;;  %v896_v47 = vld [vmem:[#allocation4 + $0xb0] sm:$0xff] }
  0xca   : > { %914 = vmatpush.msrb.mxu0 %v882_v19  ;;  %944 = vmatpush.msrb.mxu1 %v897_v45 }
  0xcc   : > { %915 = vmatpush.msrb.mxu0 %v881_v24  ;;  %945 = vmatpush.msrb.mxu1 %v896_v47 }
  0xce   : > { %916 = vmatpush.msrb.mxu0 %v880_v25  ;;  %946 = vmatpush.msrb.mxu1 %v895_v50 }
  0xd0   : > { %827 = vmatmul.f32.gmra.mxu2 %v489_v59  ;;  %856 = vmatmul.f32.gmra.mxu3 %v490_v60 }
  0xd1   : > { %772 = vmatmul.f32.gmra.mxu0 %v491_v61  ;;  %801 = vmatmul.f32.gmra.mxu1 %v492_v62  ;;  %v891_v62 = vld [vmem:[#allocation4 + $0x88] sm:$0xff] }
  0xd2   : > { %917 = vmatpush.msrb.mxu0 %v879_v27  ;;  %947 = vmatpush.msrb.mxu1 %v894_v52 }
  0xd4   : > { %918 = vmatpush.msrb.mxu0 %v878_v28  ;;  %948 = vmatpush.msrb.mxu1 %v893_v53 }
  0xd6   : > { %919 = vmatpush.msrb.mxu0 %v877_v29  ;;  %949 = vmatpush.msrb.mxu1 %v892_v58 }
  0xd8   : > { %830 = vmatmul.f32.gmra.mxu2 %v493_v9  ;;  %859 = vmatmul.f32.gmra.mxu3 %v494_v10 }
  0xd9   : > { %775 = vmatmul.f32.gmra.mxu0 %v495_v11  ;;  %804 = vmatmul.f32.gmra.mxu1 %v496_v12 }
  0xda   : > { %920 = vmatpush.msrb.mxu0 %v876_v30  ;;  %950 = vmatpush.msrb.mxu1 %v891_v62  ;;  %v982_v62 = vld [vmem:[%s1769_s4 + $0x68] sm:$0xff] }
  0xdc   : > { %921 = vmatpush.msrb.mxu0 %v875_v31  ;;  %951 = vmatpush.msrb.mxu1 %v890_v1  ;;  %v979_v1 = vld [vmem:[%s1769_s4 + $0x50] sm:$0xff] }
  0xde   : > { %922 = vmatpush.msrb.mxu0 %v874_v32 }
  0xe0   : > { %833 = vmatmul.f32.gmra.mxu2 %v497_v17  ;;  %862 = vmatmul.f32.gmra.mxu3 %v498_v20 }
 0x11e   : > { %v651_v40 = vpop.f32.mrf.mxu0  ;;  %v680_v41 = vpop.f32.mrf.mxu1 }
 0x11f   : > { %v652_v46 = vadd.f32 %v651_v40, %v630_v43 }
 0x121   : > { %v681_v51 = vadd.f32 %v680_v41, %v652_v46 }
 0x126   : > { %v654_v48 = vpop.f32.mrf.mxu0  ;;  %v683_v49 = vpop.f32.mrf.mxu1 }
 0x127   : > { %v655_v56 = vadd.f32 %v654_v48, %v630_v43 }
 0x129   : > { %v684_v63 = vadd.f32 %v683_v49, %v655_v56 }
 0x12b   : > { %v709_v54 = vpop.f32.mrf.mxu2  ;;  %v738_v55 = vpop.f32.mrf.mxu3 }
 0x12c   : > { %v710_v57 = vadd.f32 %v709_v54, %v681_v51 }
 0x12e   : > { %v739_v59 = vadd.f32 %v738_v55, %v710_v57  ;;  %v657_v60 = vpop.f32.mrf.mxu0  ;;  %v686_v61 = vpop.f32.mrf.mxu1 }
 0x12f   : > { %v658_v4 = vadd.f32 %v657_v60, %v630_v43  ;;  %v984_v60 = vld [vmem:[%s1769_s4 + $0x78] sm:$0xff] }
 0x130   : > { %v866_v0 = vmax.f32 %v739_v59, 0.0  ;;  %986 = vmatpush.msrb.mxu2 %v984_v60 }
 0x131   : > { %v687_v10 = vadd.f32 %v686_v61, %v658_v4  ;;  %v983_v61 = vld [vmem:[%s1769_s4 + $0x70] sm:$0xff]  ;;  %v976_v4 = vld [vmem:[%s1769_s4 + $0x38] sm:$0xff] }
 0x132   : > { %923 = vmatmul.f32.vlgmr.msrb.gmra.mxu0 %v866_v0  ;;  %987 = vmatpush.msrb.mxu2 %v983_v61  ;;  %v980_v0 = vld [vmem:[%s1769_s4 + $0x58] sm:$0xff] }
 0x133   : > { %v712_v2 = vpop.f32.mrf.mxu2  ;;  %v741_v3 = vpop.f32.mrf.mxu3 }
 0x134   : > { %v713_v5 = vadd.f32 %v712_v2, %v684_v63  ;;  %v981_v63 = vld [vmem:[%s1769_s4 + $0x60] sm:$0xff]  ;;  %988 = vmatpush.msrb.mxu2 %v982_v62  ;;  %v978_v2 = vld [vmem:[%s1769_s4 + $0x48] sm:$0xff] }
 0x136   : > { %v742_v8 = vadd.f32 %v741_v3, %v713_v5  ;;  %v660_v9 = vpop.f32.mrf.mxu0  ;;  %v689_v12 = vpop.f32.mrf.mxu1  ;;  %989 = vmatpush.msrb.mxu2 %v981_v63  ;;  %v977_v3 = vld [vmem:[%s1769_s4 + $0x40] sm:$0xff]  ;;  %v975_v5 = vld [vmem:[%s1769_s4 + $0x30] sm:$0xff] }
 0x137   : > { %v661_v15 = vadd.f32 %v660_v9, %v630_v43  ;;  %v973_v9 = vld [vmem:[%s1769_s4 + $0x20] sm:$0xff] }
 0x138   : > { %v868_v11 = vmax.f32 %v742_v8, 0.0  ;;  %990 = vmatpush.msrb.mxu2 %v980_v0  ;;  %v974_v8 = vld [vmem:[%s1769_s4 + $0x28] sm:$0xff] }
 0x139   : > { %v690_v6 = vadd.f32 %v689_v12, %v661_v15  ;;  %v970_v12 = vld [vmem:[%s1769_s4 + $0x8] sm:$0xff]  ;;  %v906_v15 = vld [vmem:[%s1771_s6 + $0x2] ss:$0 sm:$0xff] }
 0x13a   : > { %926 = vmatmul.f32.gmra.mxu0 %v868_v11  ;;  %991 = vmatpush.msrb.mxu2 %v979_v1  ;;  %v971_v11 = vld [vmem:[%s1769_s4 + $0x10] sm:$0xff] }
 0x13b   : > { %v715_v13 = vpop.f32.mrf.mxu2  ;;  %v744_v14 = vpop.f32.mrf.mxu3 }
 0x13c   : > { %v716_v16 = vadd.f32 %v715_v13, %v687_v10  ;;  %992 = vmatpush.msrb.mxu2 %v978_v2  ;;  %v972_v10 = vld [vmem:[%s1769_s4 + $0x18] sm:$0xff]  ;;  %v969_v13 = vld [vmem:[%s1769_s4] sm:$0xff] }
 0x13e   : > { %v745_v17 = vadd.f32 %v744_v14, %v716_v16  ;;  %v767_v20 = vpop.f32.mrf.mxu0  ;;  %v796_v22 = vpop.f32.mrf.mxu1  ;;  %993 = vmatpush.msrb.mxu2 %v977_v3  ;;  %v1026_v16 = vld [vmem:[%s1770_s5 + $0x38] sm:$0xff] }
 0x13f   : > { %v768_v19 = vadd.f32 %v767_v20, %v631_v21  ;;  %1049 = vmatpush.msrb.mxu3 %v1026_v16 }
 0x140   : > { %v870_v7 = vmax.f32 %v745_v17, 0.0  ;;  %994 = vmatpush.msrb.mxu2 %v976_v4  ;;  %v1025_v17 = vld [vmem:[%s1770_s5 + $0x30] sm:$0xff] }
 0x141   : > { %v797_v28 = vadd.f32 %v796_v22, %v768_v19  ;;  %1050 = vmatpush.msrb.mxu3 %v1025_v17  ;;  %v1021_v19 = vld [vmem:[%s1770_s5 + $0x10] sm:$0xff] }
 0x142   : > { %929 = vmatmul.f32.gmra.mxu0 %v870_v7  ;;  %995 = vmatpush.msrb.mxu2 %v975_v5 }
 0x143   : > { %v718_v23 = vpop.f32.mrf.mxu2  ;;  %v747_v26 = vpop.f32.mrf.mxu3 }
 0x144   : > { %v719_v18 = vadd.f32 %v718_v23, %v690_v6  ;;  %996 = vmatpush.msrb.mxu2 %v974_v8  ;;  %v1024_v6 = vld [vmem:[%s1770_s5 + $0x28] sm:$0xff]  ;;  %v1023_v23 = vld [vmem:[%s1770_s5 + $0x20] sm:$0xff] }
 0x145   : > { %1051 = vmatpush.msrb.mxu3 %v1024_v6 }
 0x146   : > { %v748_v24 = vadd.f32 %v747_v26, %v719_v18  ;;  %v770_v25 = vpop.f32.mrf.mxu0  ;;  %v799_v32 = vpop.f32.mrf.mxu1  ;;  %997 = vmatpush.msrb.mxu2 %v973_v9  ;;  %v1022_v18 = vld [vmem:[%s1770_s5 + $0x18] sm:$0xff] }
 0x147   : > { %v771_v33 = vadd.f32 %v770_v25, %v631_v21  ;;  %1052 = vmatpush.msrb.mxu3 %v1023_v23  ;;  %v1020_v25 = vld [vmem:[%s1770_s5 + $0x8] sm:$0xff] }
 0x148   : > { %v872_v27 = vmax.f32 %v748_v24, 0.0  ;;  %998 = vmatpush.msrb.mxu2 %v972_v10 }
 0x149   : > { %v800_v37 = vadd.f32 %v799_v32, %v771_v33  ;;  %1053 = vmatpush.msrb.mxu3 %v1022_v18 }
 0x14a   : > { %932 = vmatmul.f32.gmra.mxu0 %v872_v27  ;;  %999 = vmatpush.msrb.mxu2 %v971_v11 }
 0x14b   : > { %v825_v29 = vpop.f32.mrf.mxu2  ;;  %v854_v30 = vpop.f32.mrf.mxu3  ;;  %1054 = vmatpush.msrb.mxu3 %v1021_v19 }
 0x14c   : > { %v826_v31 = vadd.f32 %v825_v29, %v797_v28  ;;  %1000 = vmatpush.msrb.mxu2 %v970_v12 }
 0x14d   : > { %1055 = vmatpush.msrb.mxu3 %v1020_v25 }
 0x14e   : > { %v855_v34 = vadd.f32 %v854_v30, %v826_v31  ;;  %v773_v36 = vpop.f32.mrf.mxu0  ;;  %v802_v43 = vpop.f32.mrf.mxu1  ;;  %1001 = vmatpush.msrb.mxu2 %v969_v13 }
 0x14f   : > { %v774_v41 = vadd.f32 %v773_v36, %v631_v21 }
 0x150   : > { %v867_v35 = vmax.f32 %v855_v34, 0.0 }
 0x151   : > { %v803_v45 = vadd.f32 %v802_v43, %v774_v41  ;;  %v985_v41 = vld [vmem:[%s1771_s6 + $0x3] ss:$0 sm:$0xff] }
 0x152   : > { %952 = vmatmul.f32.vlgmr.msrb.gmra.mxu1 %v867_v35 }
 0x153   : > { %v828_v38 = vpop.f32.mrf.mxu2  ;;  %v857_v39 = vpop.f32.mrf.mxu3 }
 0x154   : > { %v829_v40 = vadd.f32 %v828_v38, %v800_v37 }
 0x156   : > { %v858_v42 = vadd.f32 %v857_v39, %v829_v40  ;;  %v776_v46 = vpop.f32.mrf.mxu0  ;;  %v805_v53 = vpop.f32.mrf.mxu1  ;;  %v1019_v40 = vld [vmem:[%s1770_s5] sm:$0xff] }
 0x157   : > { %v777_v50 = vadd.f32 %v776_v46, %v631_v21  ;;  %1056 = vmatpush.msrb.mxu3 %v1019_v40 }
 0x158   : > { %v869_v44 = vmax.f32 %v858_v42, 0.0 }
 0x159   : > { %v806_v54 = vadd.f32 %v805_v53, %v777_v50 }
 0x15a   : > { %955 = vmatmul.f32.gmra.mxu1 %v869_v44 }
 0x15b   : > { %v831_v47 = vpop.f32.mrf.mxu2  ;;  %v860_v48 = vpop.f32.mrf.mxu3 }
 0x15c   : > { %v832_v49 = vadd.f32 %v831_v47, %v803_v45 }
 0x15e   : > { %v861_v51 = vadd.f32 %v860_v48, %v832_v49 }
 0x160   : > { %v871_v52 = vmax.f32 %v861_v51, 0.0 }
 0x162   : > { %958 = vmatmul.f32.gmra.mxu1 %v871_v52 }
 0x163   : > { %v834_v55 = vpop.f32.mrf.mxu2  ;;  %v863_v57 = vpop.f32.mrf.mxu3 }
 0x164   : > { %v835_v56 = vadd.f32 %v834_v55, %v806_v54  ;;  %v1027_v54 = vld [vmem:[%s1771_s6 + $0x4] ss:$0 sm:$0xff] }
 0x166   : > { %v864_v58 = vadd.f32 %v863_v57, %v835_v56 }
 0x168   : > { %v873_v59 = vmax.f32 %v864_v58, 0.0 }
 0x16a   : > { %961 = vmatmul.f32.gmra.mxu1 %v873_v59 }
 0x1af   : > { %v924_v14 = vpop.f32.mrf.mxu0 }
 0x1b0   : > { %v925_v20 = vadd.f32 %v924_v14, %v906_v15 }
 0x1b7   : > { %v927_v7 = vpop.f32.mrf.mxu0 }
 0x1b8   : > { %v928_v24 = vadd.f32 %v927_v7, %v906_v15 }
 0x1bf   : > { %v930_v29 = vpop.f32.mrf.mxu0 }
 0x1c0   : > { %v931_v31 = vadd.f32 %v930_v29, %v906_v15 }
 0x1c7   : > { %v933_v35 = vpop.f32.mrf.mxu0 }
 0x1c8   : > { %v934_v36 = vadd.f32 %v933_v35, %v906_v15 }
 0x1cf   : > { %v953_v21 = vpop.f32.mrf.mxu1 }
 0x1d0   : > { %v954_v22 = vadd.f32 %v953_v21, %v925_v20 }
 0x1d2   : > { %v965_v26 = vmax.f32 %v954_v22, 0.0 }
 0x1d4   : > { %1002 = vmatmul.f32.vlgmr.msrb.gmra.mxu2 %v965_v26 }
 0x1d7   : > { %v956_v27 = vpop.f32.mrf.mxu1 }
 0x1d8   : > { %v957_v28 = vadd.f32 %v956_v27, %v928_v24 }
 0x1da   : > { %v966_v30 = vmax.f32 %v957_v28, 0.0 }
 0x1dc   : > { %1005 = vmatmul.f32.gmra.mxu2 %v966_v30 }
 0x1df   : > { %v959_v32 = vpop.f32.mrf.mxu1 }
 0x1e0   : > { %v960_v33 = vadd.f32 %v959_v32, %v931_v31 }
 0x1e2   : > { %v967_v34 = vmax.f32 %v960_v33, 0.0 }
 0x1e4   : > { %1008 = vmatmul.f32.gmra.mxu2 %v967_v34 }
 0x1e7   : > { %v962_v37 = vpop.f32.mrf.mxu1 }
 0x1e8   : > { %v963_v38 = vadd.f32 %v962_v37, %v934_v36 }
 0x1ea   : > { %v968_v39 = vmax.f32 %v963_v38, 0.0 }
 0x1ec   : > { %1011 = vmatmul.f32.gmra.mxu2 %v968_v39 }
 0x257   : > { %v1003_v42 = vpop.f32.mrf.mxu2 }
 0x258   : > { %v1004_v43 = vadd.f32 %v1003_v42, %v985_v41 }
 0x25a   : > { %v1015_v44 = vmax.f32 %v1004_v43, 0.0 }
 0x25c   : > { %1279 = vmatmul.msk.f32.vlgmr.msrb.gmra.mxu3 %vm1028_vm1, %v1015_v44 }
 0x25f   : > { %v1006_v45 = vpop.f32.mrf.mxu2 }
 0x260   : > { %v1007_v46 = vadd.f32 %v1006_v45, %v985_v41 }
 0x262   : > { %v1016_v47 = vmax.f32 %v1007_v46, 0.0 }
 0x264   : > { %1280 = vmatmul.msk.f32.gmra.mxu3 %vm1028_vm1, %v1016_v47 }
 0x267   : > { %v1009_v48 = vpop.f32.mrf.mxu2 }
 0x268   : > { %v1010_v49 = vadd.f32 %v1009_v48, %v985_v41 }
 0x26a   : > { %v1017_v50 = vmax.f32 %v1010_v49, 0.0 }
 0x26c   : > { %1281 = vmatmul.msk.f32.gmra.mxu3 %vm1028_vm1, %v1017_v50 }
 0x26f   : > { %v1012_v51 = vpop.f32.mrf.mxu2 }
 0x270   : > { %v1013_v52 = vadd.f32 %v1012_v51, %v985_v41 }
 0x272   : > { %v1018_v53 = vmax.f32 %v1013_v52, 0.0 }
 0x274   : > { %1282 = vmatmul.msk.f32.gmra.mxu3 %vm1028_vm1, %v1018_v53 }
 0x2df   : > { %v1058_v55 = vpop.f32.mrf.mxu3 }
 0x2e0   : > { %v1059_v56 = vadd.f32 %v1058_v55, %v1027_v54 }
 0x2e2   : > { %v1071_v57 = vsel %vm1070_vm2, %v1059_v56, -inf }
 0x2e3   : > { %1072 = vmax.xlane.f32.xlu0 %v1071_v57 }
 0x2e7   : > { %v1061_v58 = vpop.f32.mrf.mxu3 }
 0x2e8   : > { %v1062_v59 = vadd.f32 %v1061_v58, %v1027_v54 }
 0x2ea   : > { %v1074_v60 = vsel %vm1070_vm2, %v1062_v59, -inf }
 0x2eb   : > { %1075 = vmax.xlane.f32.xlu0 %v1074_v60 }
 0x2ef   : > { %v1064_v61 = vpop.f32.mrf.mxu3 }
 0x2f0   : > { %v1065_v62 = vadd.f32 %v1064_v61, %v1027_v54 }
 0x2f2   : > { %v1077_v63 = vsel %vm1070_vm2, %v1065_v62, -inf }
 0x2f3   : > { %1078 = vmax.xlane.f32.xlu1 %v1077_v63 }
 0x2f7   : > { %v1067_v0 = vpop.f32.mrf.mxu3 }
 0x2f8   : > { %v1068_v1 = vadd.f32 %v1067_v0, %v1027_v54 }
 0x2fa   : > { %v1080_v2 = vsel %vm1070_vm2, %v1068_v1, -inf }
 0x2fb   : > { %1081 = vmax.xlane.f32.xlu1 %v1080_v2 }
 0x356   : > { %v1073_v3 = vpop.xlane.xlu0 %1072 }
 0x357   : > { %v1083_v4 = vsub.f32 %v1059_v56, %v1073_v3 }
 0x359   : > { %v1087_v5 = vmul.f32 1.442695, %v1083_v4 }
 0x35b   : > { %1318 = vpow2.f32 %v1087_v5 }
 0x35e   : > { %v1076_v8 = vpop.xlane.xlu0 %1075 }
 0x35f   : > { %v1084_v9 = vsub.f32 %v1062_v59, %v1076_v8 }
 0x361   : > { %v1319_v10 = vpop.eup %1318  ;;  %v1089_v11 = vmul.f32 1.442695, %v1084_v9 }
 0x362   : > { %v1095_v12 = vsel %vm1070_vm2, %v1319_v10, 0.0 }
 0x363   : > { %1320 = vpow2.f32 %v1089_v11  ;;  %1096 = vadd.xlane.f32.xlu2 %v1095_v12 }
 0x366   : > { %v1079_v13 = vpop.xlane.xlu1 %1078 }
 0x367   : > { %v1085_v14 = vsub.f32 %v1065_v62, %v1079_v13 }
 0x369   : > { %v1321_v15 = vpop.eup %1320  ;;  %v1091_v16 = vmul.f32 1.442695, %v1085_v14 }
 0x36a   : > { %v1098_v17 = vsel %vm1070_vm2, %v1321_v15, 0.0 }
 0x36b   : > { %1322 = vpow2.f32 %v1091_v16  ;;  %1099 = vadd.xlane.f32.xlu2 %v1098_v17 }
 0x36e   : > { %v1082_v20 = vpop.xlane.xlu1 %1081 }
 0x36f   : > { %v1086_v6 = vsub.f32 %v1068_v1, %v1082_v20 }
 0x371   : > { %v1737_v7 = vpop.eup %1322  ;;  %v1093_v21 = vmul.f32 1.442695, %v1086_v6 }
 0x372   : > { %v1101_v22 = vsel %vm1070_vm2, %v1737_v7, 0.0 }
 0x373   : > { %1324 = vpow2.f32 %v1093_v21  ;;  %1102 = vadd.xlane.f32.xlu0 %v1101_v22 }
 0x379   : > { %v1741_v23 = vpop.eup %1324 }
 0x37a   : > { %v1104_v26 = vsel %vm1070_vm2, %v1741_v23, 0.0 }
 0x37b   : > { %1105 = vadd.xlane.f32.xlu1 %v1104_v26 }
 0x3d6   : > { %v1097_v18 = vpop.xlane.xlu2 %1096 }
 0x3d7   : > { %1326 = vrcp.f32 %v1097_v18  ;;  %v1118_v28 = vand.u32 2147483648, %v1097_v18  ;;  %v1116_v30 = vand.u32 2147483647, %v1097_v18  ;;  %vm1112_vm4 = vweird.f32 %v1097_v18 }
 0x3d9   : > { %v1119_v33 = vor.u32 1.1754944e-38, %v1118_v28  ;;  %vm1117_vm6 = vcmp.eq.f32.partialorder %v1116_v30, 8.507059e+37 }
 0x3dd   : > { %v1327_v19 = vpop.eup %1326 }
 0x3de   : > { %v1108_v24 = vmul.f32 %v1327_v19, %v1097_v18  ;;  %v1100_v25 = vpop.xlane.xlu2 %1099  ;;  %vm1113_vm3 = vweird.f32 %v1327_v19 }
 0x3df   : > { %1328 = vrcp.f32 %v1100_v25  ;;  %vm1114_vm5 = vmor %vm1112_vm4, %vm1113_vm3  ;;  %v1132_v40 = vand.u32 2147483648, %v1100_v25  ;;  %v1130_v42 = vand.u32 2147483647, %v1100_v25  ;;  %vm1126_vm8 = vweird.f32 %v1100_v25 }
 0x3e0   : > { %v1109_v27 = vsub.f32 1.0, %v1108_v24 }
 0x3e1   : > { %v1133_v45 = vor.u32 1.1754944e-38, %v1132_v40  ;;  %vm1131_vm10 = vcmp.eq.f32.partialorder %v1130_v42, 8.507059e+37 }
 0x3e2   : > { %v1110_v29 = vmul.f32 %v1327_v19, %v1109_v27 }
 0x3e4   : > { %v1111_v31 = vadd.f32 %v1327_v19, %v1110_v29 }
 0x3e5   : > { %v1329_v32 = vpop.eup %1328 }
 0x3e6   : > { %v1115_v34 = vsel %vm1114_vm5, %v1327_v19, %v1111_v31  ;;  %v1122_v35 = vmul.f32 %v1329_v32, %v1100_v25  ;;  %v1103_v36 = vpop.xlane.xlu0 %1102  ;;  %vm1127_vm7 = vweird.f32 %v1329_v32 }
 0x3e7   : > { %v1120_v37 = vsel %vm1117_vm6, %v1119_v33, %v1115_v34  ;;  %1330 = vrcp.f32 %v1103_v36  ;;  %vm1128_vm9 = vmor %vm1126_vm8, %vm1127_vm7  ;;  %v1146_v52 = vand.u32 2147483648, %v1103_v36  ;;  %v1144_v54 = vand.u32 2147483647, %v1103_v36 }
 0x3e8   : > { %v1163_v38 = vmul.f32 %v1319_v10, %v1120_v37  ;;  %v1123_v39 = vsub.f32 1.0, %v1122_v35  ;;  %vm1140_vm12 = vweird.f32 %v1103_v36 }
 0x3e9   : > { %v1147_v57 = vor.u32 1.1754944e-38, %v1146_v52  ;;  %vm1145_vm14 = vcmp.eq.f32.partialorder %v1144_v54, 8.507059e+37 }
 0x3ea   : > { %1167 = vst.msk [vmem:[%s1750_s9] sm:$0xff] %vm1070_vm2, %v1163_v38  ;;  %v1124_v41 = vmul.f32 %v1329_v32, %v1123_v39 }
 0x3ec   : > { %v1125_v43 = vadd.f32 %v1329_v32, %v1124_v41 }
 0x3ed   : > { %v1331_v44 = vpop.eup %1330 }
 0x3ee   : > { %v1129_v46 = vsel %vm1128_vm9, %v1329_v32, %v1125_v43  ;;  %v1136_v47 = vmul.f32 %v1331_v44, %v1103_v36  ;;  %v1106_v48 = vpop.xlane.xlu1 %1105  ;;  %vm1141_vm11 = vweird.f32 %v1331_v44 }
 0x3ef   : > { %v1134_v49 = vsel %vm1131_vm10, %v1133_v45, %v1129_v46  ;;  %1332 = vrcp.f32 %v1106_v48  ;;  %vm1142_vm13 = vmor %vm1140_vm12, %vm1141_vm11  ;;  %v1160_v63 = vand.u32 2147483648, %v1106_v48  ;;  %v1158_v1 = vand.u32 2147483647, %v1106_v48 }
 0x3f0   : > { %v1164_v50 = vmul.f32 %v1321_v15, %v1134_v49  ;;  %v1137_v51 = vsub.f32 1.0, %v1136_v47  ;;  %vm1154_vm0 = vweird.f32 %v1106_v48 }
 0x3f1   : > { %v1161_v3 = vor.u32 1.1754944e-38, %v1160_v63  ;;  %vm1159_vm3 = vcmp.eq.f32.partialorder %v1158_v1, 8.507059e+37 }
 0x3f2   : > { %1168 = vst.msk [vmem:[%s1750_s9 + $0x8] sm:$0xff] %vm1070_vm2, %v1164_v50  ;;  %v1138_v53 = vmul.f32 %v1331_v44, %v1137_v51 }
 0x3f4   : > { %v1139_v55 = vadd.f32 %v1331_v44, %v1138_v53 }
 0x3f5   : > { %v1333_v56 = vpop.eup %1332 }
 0x3f6   : > { %v1143_v58 = vsel %vm1142_vm13, %v1331_v44, %v1139_v55  ;;  %v1150_v59 = vmul.f32 %v1333_v56, %v1106_v48  ;;  %vm1155_vm15 = vweird.f32 %v1333_v56 }
 0x3f7   : > { %v1148_v60 = vsel %vm1145_vm14, %v1147_v57, %v1143_v58  ;;  %vm1156_vm1 = vmor %vm1154_vm0, %vm1155_vm15 }
 0x3f8   : > { %v1165_v61 = vmul.f32 %v1737_v7, %v1148_v60  ;;  %v1151_v62 = vsub.f32 1.0, %v1150_v59 }
 0x3fa   : > { %1169 = vst.msk [vmem:[%s1750_s9 + $0x10] sm:$0xff] %vm1070_vm2, %v1165_v61  ;;  %v1152_v0 = vmul.f32 %v1333_v56, %v1151_v62 }
 0x3fc   : > { %v1153_v2 = vadd.f32 %v1333_v56, %v1152_v0 }
 0x3fe   : > { %v1157_v4 = vsel %vm1156_vm1, %v1333_v56, %v1153_v2 }
 0x3ff   : > { %v1162_v5 = vsel %vm1159_vm3, %v1161_v3, %v1157_v4 }
 0x400   : > { %v1166_v8 = vmul.f32 %v1741_v23, %v1162_v5 }
 0x402   : > { %1170 = vst.msk [vmem:[%s1750_s9 + $0x18] sm:$0xff] %vm1070_vm2, %v1166_v8 }
 0x403 PF: > { %s19_s24 = sadd.s32 1, %s1408_s24  }
 0x404   : > { %p16_p7 = scmp.ge.s32.totalorder %s19_s24, 4  }
 0x406   :  { %18 = sbr.rel (!%p16_p7) target bundleno = 2 (0x2), region = 88 }
 0x40b   :  { %1193 = vsyncpa [#allocation3], 1 }
 0x40c   :  { %1195 = vsyncpa [#allocation3 + $0x1], 1 }
 0x40d   :  { %1196 = vsyncpa [#allocation5], 1 }

</bundles_post_ra>
